<compile_context>
chip_gen: v7x
topology: tpu7x:2x2x1
jax: 0.10.0
libtpu: 0.0.40
codegen_flags: <defaults>
</compile_context>

<pallas_src>
import functools

import jax
import jax.numpy as jnp
from jax.experimental import pallas as pl
from jax.experimental.pallas import tpu as pltpu

BN_EPS = 1e-5
LEAKY_SLOPE = 0.2
_MIB = 1 << 20


# --------------------------------------------------------------------------- #
# Small helpers
# --------------------------------------------------------------------------- #
def _round_up(n, m):
    return ((n + m - 1) // m) * m


def _pad2(a, rows, cols):
    pr, pc = rows - a.shape[0], cols - a.shape[1]
    if pr or pc:
        a = jnp.pad(a, ((0, pr), (0, pc)))
    return a


@functools.lru_cache(maxsize=1)
def _vmem_capacity_bytes():
    try:
        return int(pltpu.get_tpu_info().vmem_capacity_bytes)
    except Exception:
        return 64 * _MIB          # conservative (v7x-sized) fallback


def _pick_tile_n(d_pad):
    # Largest of {512, 256, 128} that divides d_pad while giving >= 2 tiles
    # (even tile counts balance v7x's 2 TensorCores; bigger tiles cut per-step
    # overhead and improve weight-DMA efficiency on v5e/v6e).
    for t in (512, 256, 128):
        if d_pad % t == 0 and d_pad // t >= 2:
            return t
    return 128                    # d_pad == 128


def _vmem_limit(est, cap):
    return int(min(cap - 2 * _MIB, max(2 * est + 4 * _MIB, 32 * _MIB)))


def _two_phase_vmem_est(b_pad, d_pad, tile_n):
    bf16, f32 = 2, 4
    resident = b_pad * d_pad * bf16                      # Buffered(1) resident operand
    per_step = (d_pad * tile_n * bf16                    # weight column tile
                + 8 * tile_n * f32                       # packed bias/gamma/beta tile
                + 2 * b_pad * tile_n * f32)              # residual-x + output tiles
    temps = 4 * b_pad * tile_n * f32                     # f32 intermediates
    return resident + 2 * per_step + temps


def _fused_vmem_est(b_pad, d_pad, tile_n):
    bf16, f32 = 2, 4
    b_sc = max(b_pad, 16)                                # bf16 sublane tile padding
    n_tiles = d_pad // tile_n
    resident = b_pad * d_pad * bf16 + n_tiles * b_sc * tile_n * bf16   # x + h1 scratch
    per_step = (d_pad * tile_n * bf16 + 8 * tile_n * f32 + 2 * b_pad * tile_n * f32)
    temps = 4 * b_pad * tile_n * f32
    return resident + 2 * per_step + temps


# --------------------------------------------------------------------------- #
# In-kernel math
# --------------------------------------------------------------------------- #
def _bn_stats(h, b_real):
    """Per-feature batch mean / biased variance (two-pass; padded rows masked)."""
    b_pad = h.shape[0]
    valid = None
    if b_pad != b_real:
        valid = jax.lax.broadcasted_iota(jnp.int32, h.shape, 0) < b_real
    inv_b = 1.0 / float(b_real)
    hm = h if valid is None else jnp.where(valid, h, 0.0)
    mean = jnp.sum(hm, axis=0, keepdims=True) * inv_b
    c = h - mean
    if valid is not None:
        c = jnp.where(valid, c, 0.0)
    var = jnp.sum(c * c, axis=0, keepdims=True) * inv_b
    return mean, var


def _bias_leaky_bn(h, vec, b_real):
    """h: (b_pad, tile_n) f32 matmul result.  vec: (3, tile_n) = bias/gamma/beta."""
    bias, gamma, beta = vec[0:1, :], vec[1:2, :], vec[2:3, :]
    h = h + bias
    h = jnp.maximum(h, LEAKY_SLOPE * h)                  # LeakyReLU(0.2): mul + max
    mean, var = _bn_stats(h, b_real)
    scale = gamma * jax.lax.rsqrt(var + BN_EPS)          # folded per-feature scale (EUP)
    return (h - mean) * scale + beta


# --------------------------------------------------------------------------- #
# Kernels
# --------------------------------------------------------------------------- #
def _phase1_kernel(x_ref, w_ref, vec_ref, h1_ref, *, b_real):
    """h1[:, tile] = BN1(LeakyReLU(x @ W1[:, tile] + b1[tile]))."""
    h = jnp.dot(x_ref[...], w_ref[...], preferred_element_type=jnp.float32)
    h1_ref[...] = _bias_leaky_bn(h, vec_ref[...], b_real).astype(h1_ref.dtype)


def _phase2_kernel(xres_ref, h1_ref, w_ref, vec_ref, o_ref, *, b_real):
    """out[:, tile] = x[:, tile] + BN2(LeakyReLU(h1 @ W2[:, tile] + b2[tile]))."""
    h = jnp.dot(h1_ref[...], w_ref[...], preferred_element_type=jnp.float32)
    o_ref[...] = (xres_ref[...]
                  + _bias_leaky_bn(h, vec_ref[...], b_real)).astype(o_ref.dtype)


def _fused_kernel(x_ref, xres_ref, w_ref, vec_ref, o_ref, h1_ref,
                  *, b_real, tile_n, n_tiles):
    """Both stages in one call; h1 kept in a persistent VMEM scratch.

    grid = (phase, feature_tile).  Phase 0 writes h1 tiles into the scratch;
    phase 1 contracts the full scratch against W2 column tiles (static unroll).
    """
    p = pl.program_id(0)
    j = pl.program_id(1)

    @pl.when(p == 0)
    def _():
        h = jnp.dot(x_ref[...], w_ref[...], preferred_element_type=jnp.float32)
        h1_ref[j] = _bias_leaky_bn(h, vec_ref[...], b_real).astype(h1_ref.dtype)

    @pl.when(p == 1)
    def _():
        acc = jnp.zeros((x_ref.shape[0], tile_n), jnp.float32)
        for k in range(n_tiles):                         # static trip count -> unrolled
            acc = acc + jnp.dot(h1_ref[k],
                                w_ref[k * tile_n:(k + 1) * tile_n, :],
                                preferred_element_type=jnp.float32)
        o_ref[...] = (xres_ref[...]
                      + _bias_leaky_bn(acc, vec_ref[...], b_real)).astype(o_ref.dtype)


# --------------------------------------------------------------------------- #
# One-time parameter preparation (hoisted out of the per-call path)
# --------------------------------------------------------------------------- #
def prepare_params(params):
    """Pad / transpose / bf16-cast weights and pack per-feature vectors once."""
    dim = params["w1"].shape[0]
    d_pad = _round_up(dim, 128)
    w1t = _pad2(jnp.asarray(params["w1"], jnp.float32).T, d_pad, d_pad)
    w2t = _pad2(jnp.asarray(params["w2"], jnp.float32).T, d_pad, d_pad)
    w = jnp.stack([w1t, w2t]).astype(jnp.bfloat16)               # (2, d_pad, d_pad)

    def vec3(b, g, be):
        m = jnp.stack([jnp.asarray(b, jnp.float32),
                       jnp.asarray(g, jnp.float32),
                       jnp.asarray(be, jnp.float32)])            # (3, dim)
        return _pad2(m, 3, d_pad)

    v = jnp.stack([vec3(params["b1"], params["gamma1"], params["beta1"]),
                   vec3(params["b2"], params["gamma2"], params["beta2"])])  # (2,3,d_pad)
    return {"w": w, "v": v}


# --------------------------------------------------------------------------- #
# Wrapper
# --------------------------------------------------------------------------- #
@functools.partial(jax.jit, static_argnames=("mode",))
def resblock_pallas(x, prepped, mode="auto"):
    """x: (B, dim) float32.  prepped: output of prepare_params().  mode:
    'auto' | 'fused' | 'two_phase'."""
    B, dim = x.shape
    w, v = prepped["w"], prepped["v"]
    d_pad = w.shape[1]
    assert d_pad == _round_up(dim, 128), "prepped params do not match x's dim"
    b_pad = _round_up(B, 8)
    tile_n = _pick_tile_n(d_pad)
    n_tiles = d_pad // tile_n
    vmem_cap = _vmem_capacity_bytes()
    vmem = pltpu.MemorySpace.VMEM

    # Per-call glue touches only x (weights were prepared once).
    x_pad = _pad2(x.astype(jnp.float32), b_pad, d_pad)           # f32 residual path
    x_bf16 = x_pad.astype(jnp.bfloat16)                          # MXU operand

    fused_est = _fused_vmem_est(b_pad, d_pad, tile_n)
    if mode == "auto":
        # Fuse on 128 MiB single-TC chips (v5e/v6e) when the working set fits;
        # keep two-phase (feature axis "parallel" across v7x's 2 TCs) otherwise.
        use_fused = vmem_cap >= 100 * _MIB and fused_est <= vmem_cap - 24 * _MIB
    elif mode == "fused":
        use_fused = True
    else:
        use_fused = False

    if use_fused:
        w_spec = pl.BlockSpec((pl.Squeezed(), d_pad, tile_n), lambda p, j: (p, 0, j),
                              memory_space=vmem)
        v_spec = pl.BlockSpec((pl.Squeezed(), 3, tile_n), lambda p, j: (p, 0, j),
                              memory_space=vmem)
        # Constant block index during phase 0 -> no garbage writebacks / refetches.
        xres_spec = pl.BlockSpec((b_pad, tile_n), lambda p, j: (0, j * p),
                                 memory_space=vmem)
        out_spec = pl.BlockSpec((b_pad, tile_n), lambda p, j: (0, j * p),
                                memory_space=vmem)
        x_res_spec = pl.BlockSpec((b_pad, d_pad), lambda p, j: (0, 0),
                                  memory_space=vmem, pipeline_mode=pl.Buffered(1))

        cp = pltpu.CompilerParams(
            dimension_semantics=("arbitrary", "arbitrary"),
            vmem_limit_bytes=_vmem_limit(fused_est, vmem_cap))
        ce = pl.CostEstimate(
            flops=int(4 * b_pad * d_pad * d_pad),
            transcendentals=int(2 * d_pad),
            bytes_accessed=int(2 * d_pad * d_pad * 2 + b_pad * d_pad * (2 + 4 + 4)
                               + 6 * d_pad * 4))

        out_pad = pl.pallas_call(
            functools.partial(_fused_kernel, b_real=B, tile_n=tile_n, n_tiles=n_tiles),
            out_shape=jax.ShapeDtypeStruct((b_pad, d_pad), jnp.float32),
            grid=(2, n_tiles),
            in_specs=[x_res_spec, xres_spec, w_spec, v_spec],
            out_specs=out_spec,
            scratch_shapes=[pltpu.VMEM((n_tiles, b_pad, tile_n), jnp.bfloat16)],
            compiler_params=cp,
            cost_estimate=ce,
        )(x_bf16, x_pad, w, v)
        return out_pad[:B, :dim]

    # --------------------- two-phase path (v7x / large shapes) --------------------- #
    # TODO(synk): K-tiled accumulator fallback for v7x when B*D bf16 residents exceed
    # ~48 MiB is not implemented; this path still keeps x / h1 fully resident.
    resident_spec = pl.BlockSpec((b_pad, d_pad), lambda j: (0, 0),
                                 memory_space=vmem, pipeline_mode=pl.Buffered(1))
    col_spec = pl.BlockSpec((b_pad, tile_n), lambda j: (0, j), memory_space=vmem)
    w1_spec = pl.BlockSpec((pl.Squeezed(), d_pad, tile_n), lambda j: (0, 0, j),
                           memory_space=vmem)
    w2_spec = pl.BlockSpec((pl.Squeezed(), d_pad, tile_n), lambda j: (1, 0, j),
                           memory_space=vmem)
    v1_spec = pl.BlockSpec((pl.Squeezed(), 3, tile_n), lambda j: (0, 0, j),
                           memory_space=vmem)
    v2_spec = pl.BlockSpec((pl.Squeezed(), 3, tile_n), lambda j: (1, 0, j),
                           memory_space=vmem)

    est = _two_phase_vmem_est(b_pad, d_pad, tile_n)
    cp = pltpu.CompilerParams(dimension_semantics=("parallel",),
                              vmem_limit_bytes=_vmem_limit(est, vmem_cap))
    mm_flops = int(2 * b_pad * d_pad * d_pad)
    ce1 = pl.CostEstimate(flops=mm_flops, transcendentals=int(d_pad),
                          bytes_accessed=int(d_pad * d_pad * 2 + 2 * b_pad * d_pad * 2
                                             + 3 * d_pad * 4))
    ce2 = pl.CostEstimate(flops=mm_flops, transcendentals=int(d_pad),
                          bytes_accessed=int(d_pad * d_pad * 2 + b_pad * d_pad * 2
                                             + 2 * b_pad * d_pad * 4 + 3 * d_pad * 4))

    h1 = pl.pallas_call(
        functools.partial(_phase1_kernel, b_real=B),
        out_shape=jax.ShapeDtypeStruct((b_pad, d_pad), jnp.bfloat16),
        grid=(n_tiles,),
        in_specs=[resident_spec, w1_spec, v1_spec],
        out_specs=col_spec,
        compiler_params=cp,
        cost_estimate=ce1,
    )(x_bf16, w, v)

    out_pad = pl.pallas_call(
        functools.partial(_phase2_kernel, b_real=B),
        out_shape=jax.ShapeDtypeStruct((b_pad, d_pad), jnp.float32),
        grid=(n_tiles,),
        in_specs=[col_spec, resident_spec, w2_spec, v2_spec],
        out_specs=col_spec,
        input_output_aliases={0: 0},          # padded f32 x (fresh intermediate) -> out
        compiler_params=cp,
        cost_estimate=ce2,
    )(x_pad, h1, w, v)
    return out_pad[:B, :dim]


# --------------------------------------------------------------------------- #
# Init + references + test
# --------------------------------------------------------------------------- #
def init_params(key, dim):
    """Deterministic synthetic init matching nn.Linear / nn.BatchNorm1d shapes."""
    k1, k2, k3, k4 = jax.random.split(key, 4)
    bound = 1.0 / jnp.sqrt(dim)
    return {
        "w1": jax.random.uniform(k1, (dim, dim), jnp.float32, -bound, bound),
        "b1": jax.random.uniform(k2, (dim,), jnp.float32, -bound, bound),
        "gamma1": jnp.ones((dim,), jnp.float32),
        "beta1": jnp.zeros((dim,), jnp.float32),
        "w2": jax.random.uniform(k3, (dim, dim), jnp.float32, -bound, bound),
        "b2": jax.random.uniform(k4, (dim,), jnp.float32, -bound, bound),
        "gamma2": jnp.ones((dim,), jnp.float32),
        "beta2": jnp.zeros((dim,), jnp.float32),
    }


def _leaky(v):
    return jnp.maximum(v, LEAKY_SLOPE * v)


def _bn_ref(v, gamma, beta):
    m = jnp.mean(v, axis=0, keepdims=True)
    var = jnp.mean((v - m) ** 2, axis=0, keepdims=True)
    return (v - m) * (gamma * jax.lax.rsqrt(var + BN_EPS)) + beta


def resblock_reference_f32(x, params):
    """Pure-f32 JAX reference mirroring the PyTorch forward (training-mode BN)."""
    h = _bn_ref(_leaky(x @ params["w1"].T + params["b1"]),
                params["gamma1"], params["beta1"])
    h = _bn_ref(_leaky(h @ params["w2"].T + params["b2"]),
                params["gamma2"], params["beta2"])
    return x + h


def resblock_reference_bf16(x, params):
    """Reference that mirrors the kernel's bf16-MXU / f32-accumulate path."""
    def mm(a, w):
        return jnp.dot(a.astype(jnp.bfloat16), w.T.astype(jnp.bfloat16),
                       preferred_element_type=jnp.float32)
    h = _bn_ref(_leaky(mm(x, params["w1"]) + params["b1"]),
                params["gamma1"], params["beta1"])
    h = h.astype(jnp.bfloat16).astype(jnp.float32)       # h1 is stored as bf16
    h = _bn_ref(_leaky(mm(h, params["w2"]) + params["b2"]),
                params["gamma2"], params["beta2"])
    return x + h


if __name__ == "__main__":
    key = jax.random.PRNGKey(0)
    # (8, 32): aligned-ish small case.  (5, 96): exercises batch + feature padding.
    cases = [((8, 32), ("auto", "fused", "two_phase")),
             ((5, 96), ("fused", "two_phase"))]
    for (B, dim), modes in cases:
        kx, kp, key = jax.random.split(key, 3)
        x = jax.random.normal(kx, (B, dim), jnp.float32)
        params = init_params(kp, dim)
        prepped = prepare_params(params)

        ref_bf16 = resblock_reference_bf16(x, params)    # matches kernel numerics
        ref_f32 = resblock_reference_f32(x, params)      # true-spec f32 forward

        for mode in modes:
            out = jax.block_until_ready(resblock_pallas(x, prepped, mode=mode))
            assert out.shape == (B, dim) and out.dtype == jnp.float32
            assert jnp.allclose(out, ref_bf16, atol=5e-3, rtol=5e-3), \
                f"({B},{dim}) mode={mode}: mismatch vs bf16-matched ref"
            assert jnp.allclose(out, ref_f32, atol=1e-1, rtol=1e-1), \
                f"({B},{dim}) mode={mode}: mismatch vs f32 ref"
    print("KERNEL_OK")
</pallas_src>

<mosaic_0001>
module attributes {stable_mosaic.version = 11 : i64} {
  func.func @_phase1_kernel(%arg0: i32, %arg1: memref<8x128xbf16, #tpu.memory_space<vmem>>, %arg2: memref<1x128x128xbf16, #tpu.memory_space<vmem>>, %arg3: memref<1x3x128xf32, #tpu.memory_space<vmem>>, %arg4: memref<8x128xbf16, #tpu.memory_space<vmem>>) attributes {dimension_semantics = [#tpu.dimension_semantics<parallel>], iteration_bounds = array<i64: 1>, scalar_prefetch = 0 : i64, scratch_operands = 0 : i64, tpu.core_type = #tpu.core_type<tc>, window_params = [{pipeline_mode = #tpu.pipeline_mode<synchronous>, transform_indices = @transform_0, window_bounds = array<i64: 8, 128>}, {transform_indices = @transform_1, window_bounds = array<i64: 1, 128, 128>}, {transform_indices = @transform_2, window_bounds = array<i64: 1, 3, 128>}, {transform_indices = @transform_3, window_bounds = array<i64: 8, 128>}]} {
    %c0 = arith.constant 0 : index
    %c0_0 = arith.constant 0 : index
    %0 = vector.load %arg1[%c0, %c0_0] : memref<8x128xbf16, #tpu.memory_space<vmem>>, vector<8x128xbf16>
    %c0_1 = arith.constant 0 : index
    %c0_2 = arith.constant 0 : index
    %c0_3 = arith.constant 0 : index
    %1 = vector.load %arg2[%c0_1, %c0_2, %c0_3] : memref<1x128x128xbf16, #tpu.memory_space<vmem>>, vector<1x128x128xbf16>
    %2 = vector.shape_cast %1 : vector<1x128x128xbf16> to vector<128x128xbf16>
    %cst = arith.constant dense<0.000000e+00> : vector<8x128xf32>
    %3 = tpu.matmul %0, %2, %cst {dimension_numbers = #tpu.dot_dimension_numbers<[1], [0], [0], [1], [0, 0, 1, 1], [], []>} : vector<8x128xbf16>, vector<128x128xbf16>, vector<8x128xf32> -> vector<8x128xf32>
    %c0_4 = arith.constant 0 : index
    %c0_5 = arith.constant 0 : index
    %c0_6 = arith.constant 0 : index
    %4 = vector.load %arg3[%c0_4, %c0_5, %c0_6] : memref<1x3x128xf32, #tpu.memory_space<vmem>>, vector<1x3x128xf32>
    %5 = vector.shape_cast %4 : vector<1x3x128xf32> to vector<3x128xf32>
    %6 = vector.extract_strided_slice %5 {offsets = [0, 0], sizes = [1, 128], strides = [1, 1]} : vector<3x128xf32> to vector<1x128xf32>
    %7 = vector.extract_strided_slice %5 {offsets = [1, 0], sizes = [1, 128], strides = [1, 1]} : vector<3x128xf32> to vector<1x128xf32>
    %8 = vector.extract_strided_slice %5 {offsets = [2, 0], sizes = [1, 128], strides = [1, 1]} : vector<3x128xf32> to vector<1x128xf32>
    %9 = vector.broadcast %6 : vector<1x128xf32> to vector<8x128xf32>
    %10 = arith.addf %3, %9 : vector<8x128xf32>
    %cst_7 = arith.constant 2.000000e-01 : f32
    %11 = vector.broadcast %cst_7 : f32 to vector<8x128xf32>
    %12 = arith.mulf %11, %10 : vector<8x128xf32>
    %13 = arith.maximumf %10, %12 : vector<8x128xf32>
    %cst_8 = arith.constant dense<0.000000e+00> : vector<128xf32>
    %14 = vector.multi_reduction <add>, %13, %cst_8 [0] : vector<8x128xf32> to vector<128xf32>
    %15 = vector.shape_cast %14 : vector<128xf32> to vector<1x128xf32>
    %cst_9 = arith.constant 1.250000e-01 : f32
    %16 = vector.broadcast %cst_9 : f32 to vector<1x128xf32>
    %17 = arith.mulf %15, %16 : vector<1x128xf32>
    %18 = vector.broadcast %17 : vector<1x128xf32> to vector<8x128xf32>
    %19 = arith.subf %13, %18 : vector<8x128xf32>
    %20 = arith.mulf %19, %19 : vector<8x128xf32>
    %cst_10 = arith.constant dense<0.000000e+00> : vector<128xf32>
    %21 = vector.multi_reduction <add>, %20, %cst_10 [0] : vector<8x128xf32> to vector<128xf32>
    %22 = vector.shape_cast %21 : vector<128xf32> to vector<1x128xf32>
    %cst_11 = arith.constant 1.250000e-01 : f32
    %23 = vector.broadcast %cst_11 : f32 to vector<1x128xf32>
    %24 = arith.mulf %22, %23 : vector<1x128xf32>
    %cst_12 = arith.constant 9.99999974E-6 : f32
    %25 = vector.broadcast %cst_12 : f32 to vector<1x128xf32>
    %26 = arith.addf %24, %25 : vector<1x128xf32>
    %27 = math.rsqrt %26 : vector<1x128xf32>
    %28 = arith.mulf %7, %27 : vector<1x128xf32>
    %29 = vector.broadcast %17 : vector<1x128xf32> to vector<8x128xf32>
    %30 = arith.subf %13, %29 : vector<8x128xf32>
    %31 = vector.broadcast %28 : vector<1x128xf32> to vector<8x128xf32>
    %32 = arith.mulf %30, %31 : vector<8x128xf32>
    %33 = vector.broadcast %8 : vector<1x128xf32> to vector<8x128xf32>
    %34 = arith.addf %32, %33 : vector<8x128xf32>
    %35 = arith.truncf %34 : vector<8x128xf32> to vector<8x128xbf16>
    %c0_13 = arith.constant 0 : index
    %c0_14 = arith.constant 0 : index
    %36 = vector.load %arg4[%c0_13, %c0_14] : memref<8x128xbf16, #tpu.memory_space<vmem>>, vector<8x128xbf16>
    tpu.vector_store %arg4[%c0_13, %c0_14], %35 {strides = array<i32>} : memref<8x128xbf16, #tpu.memory_space<vmem>>, vector<8x128xbf16>,
    return
  }
  func.func @transform_0(%arg0: i32) -> (i32, i32) {
    %c0_i32 = arith.constant 0 : i32
    %c0_i32_0 = arith.constant 0 : i32
    %c0_i32_1 = arith.constant 0 : i32
    return %c0_i32, %c0_i32_0 : i32, i32
  }
  func.func @transform_1(%arg0: i32) -> (i32, i32, i32) {
    %c0_i32 = arith.constant 0 : i32
    %c0_i32_0 = arith.constant 0 : i32
    %c0_i32_1 = arith.constant 0 : i32
    return %c0_i32, %c0_i32_0, %arg0 : i32, i32, i32
  }
  func.func @transform_2(%arg0: i32) -> (i32, i32, i32) {
    %c0_i32 = arith.constant 0 : i32
    %c0_i32_0 = arith.constant 0 : i32
    %c0_i32_1 = arith.constant 0 : i32
    return %c0_i32, %c0_i32_0, %arg0 : i32, i32, i32
  }
  func.func @transform_3(%arg0: i32) -> (i32, i32) {
    %c0_i32 = arith.constant 0 : i32
    %c0_i32_0 = arith.constant 0 : i32
    return %c0_i32, %arg0 : i32, i32
  }
}

module attributes {stable_mosaic.version = 11 : i64} {
  func.func @_phase2_kernel(%arg0: i32, %arg1: memref<8x128xf32, #tpu.memory_space<vmem>>, %arg2: memref<8x128xbf16, #tpu.memory_space<vmem>>, %arg3: memref<1x128x128xbf16, #tpu.memory_space<vmem>>, %arg4: memref<1x3x128xf32, #tpu.memory_space<vmem>>, %arg5: memref<8x128xf32, #tpu.memory_space<vmem>>) attributes {dimension_semantics = [#tpu.dimension_semantics<parallel>], iteration_bounds = array<i64: 1>, scalar_prefetch = 0 : i64, scratch_operands = 0 : i64, tpu.core_type = #tpu.core_type<tc>, window_params = [{transform_indices = @transform_0, window_bounds = array<i64: 8, 128>}, {pipeline_mode = #tpu.pipeline_mode<synchronous>, transform_indices = @transform_1, window_bounds = array<i64: 8, 128>}, {transform_indices = @transform_2, window_bounds = array<i64: 1, 128, 128>}, {transform_indices = @transform_3, window_bounds = array<i64: 1, 3, 128>}, {transform_indices = @transform_4, window_bounds = array<i64: 8, 128>}]} {
    %c0 = arith.constant 0 : index
    %c0_0 = arith.constant 0 : index
    %0 = vector.load %arg2[%c0, %c0_0] : memref<8x128xbf16, #tpu.memory_space<vmem>>, vector<8x128xbf16>
    %c0_1 = arith.constant 0 : index
    %c0_2 = arith.constant 0 : index
    %c0_3 = arith.constant 0 : index
    %1 = vector.load %arg3[%c0_1, %c0_2, %c0_3] : memref<1x128x128xbf16, #tpu.memory_space<vmem>>, vector<1x128x128xbf16>
    %2 = vector.shape_cast %1 : vector<1x128x128xbf16> to vector<128x128xbf16>
    %cst = arith.constant dense<0.000000e+00> : vector<8x128xf32>
    %3 = tpu.matmul %0, %2, %cst {dimension_numbers = #tpu.dot_dimension_numbers<[1], [0], [0], [1], [0, 0, 1, 1], [], []>} : vector<8x128xbf16>, vector<128x128xbf16>, vector<8x128xf32> -> vector<8x128xf32>
    %c0_4 = arith.constant 0 : index
    %c0_5 = arith.constant 0 : index
    %4 = vector.load %arg1[%c0_4, %c0_5] : memref<8x128xf32, #tpu.memory_space<vmem>>, vector<8x128xf32>
    %c0_6 = arith.constant 0 : index
    %c0_7 = arith.constant 0 : index
    %c0_8 = arith.constant 0 : index
    %5 = vector.load %arg4[%c0_6, %c0_7, %c0_8] : memref<1x3x128xf32, #tpu.memory_space<vmem>>, vector<1x3x128xf32>
    %6 = vector.shape_cast %5 : vector<1x3x128xf32> to vector<3x128xf32>
    %7 = vector.extract_strided_slice %6 {offsets = [0, 0], sizes = [1, 128], strides = [1, 1]} : vector<3x128xf32> to vector<1x128xf32>
    %8 = vector.extract_strided_slice %6 {offsets = [1, 0], sizes = [1, 128], strides = [1, 1]} : vector<3x128xf32> to vector<1x128xf32>
    %9 = vector.extract_strided_slice %6 {offsets = [2, 0], sizes = [1, 128], strides = [1, 1]} : vector<3x128xf32> to vector<1x128xf32>
    %10 = vector.broadcast %7 : vector<1x128xf32> to vector<8x128xf32>
    %11 = arith.addf %3, %10 : vector<8x128xf32>
    %cst_9 = arith.constant 2.000000e-01 : f32
    %12 = vector.broadcast %cst_9 : f32 to vector<8x128xf32>
    %13 = arith.mulf %12, %11 : vector<8x128xf32>
    %14 = arith.maximumf %11, %13 : vector<8x128xf32>
    %cst_10 = arith.constant dense<0.000000e+00> : vector<128xf32>
    %15 = vector.multi_reduction <add>, %14, %cst_10 [0] : vector<8x128xf32> to vector<128xf32>
    %16 = vector.shape_cast %15 : vector<128xf32> to vector<1x128xf32>
    %cst_11 = arith.constant 1.250000e-01 : f32
    %17 = vector.broadcast %cst_11 : f32 to vector<1x128xf32>
    %18 = arith.mulf %16, %17 : vector<1x128xf32>
    %19 = vector.broadcast %18 : vector<1x128xf32> to vector<8x128xf32>
    %20 = arith.subf %14, %19 : vector<8x128xf32>
    %21 = arith.mulf %20, %20 : vector<8x128xf32>
    %cst_12 = arith.constant dense<0.000000e+00> : vector<128xf32>
    %22 = vector.multi_reduction <add>, %21, %cst_12 [0] : vector<8x128xf32> to vector<128xf32>
    %23 = vector.shape_cast %22 : vector<128xf32> to vector<1x128xf32>
    %cst_13 = arith.constant 1.250000e-01 : f32
    %24 = vector.broadcast %cst_13 : f32 to vector<1x128xf32>
    %25 = arith.mulf %23, %24 : vector<1x128xf32>
    %cst_14 = arith.constant 9.99999974E-6 : f32
    %26 = vector.broadcast %cst_14 : f32 to vector<1x128xf32>
    %27 = arith.addf %25, %26 : vector<1x128xf32>
    %28 = math.rsqrt %27 : vector<1x128xf32>
    %29 = arith.mulf %8, %28 : vector<1x128xf32>
    %30 = vector.broadcast %18 : vector<1x128xf32> to vector<8x128xf32>
    %31 = arith.subf %14, %30 : vector<8x128xf32>
    %32 = vector.broadcast %29 : vector<1x128xf32> to vector<8x128xf32>
    %33 = arith.mulf %31, %32 : vector<8x128xf32>
    %34 = vector.broadcast %9 : vector<1x128xf32> to vector<8x128xf32>
    %35 = arith.addf %33, %34 : vector<8x128xf32>
    %36 = arith.addf %4, %35 : vector<8x128xf32>
    %c0_15 = arith.constant 0 : index
    %c0_16 = arith.constant 0 : index
    %37 = vector.load %arg5[%c0_15, %c0_16] : memref<8x128xf32, #tpu.memory_space<vmem>>, vector<8x128xf32>
    tpu.vector_store %arg5[%c0_15, %c0_16], %36 {strides = array<i32>} : memref<8x128xf32, #tpu.memory_space<vmem>>, vector<8x128xf32>,
    return
  }
  func.func @transform_0(%arg0: i32) -> (i32, i32) {
    %c0_i32 = arith.constant 0 : i32
    %c0_i32_0 = arith.constant 0 : i32
    return %c0_i32, %arg0 : i32, i32
  }
  func.func @transform_1(%arg0: i32) -> (i32, i32) {
    %c0_i32 = arith.constant 0 : i32
    %c0_i32_0 = arith.constant 0 : i32
    %c0_i32_1 = arith.constant 0 : i32
    return %c0_i32, %c0_i32_0 : i32, i32
  }
  func.func @transform_2(%arg0: i32) -> (i32, i32, i32) {
    %c1_i32 = arith.constant 1 : i32
    %c0_i32 = arith.constant 0 : i32
    %c0_i32_0 = arith.constant 0 : i32
    return %c1_i32, %c0_i32, %arg0 : i32, i32, i32
  }
  func.func @transform_3(%arg0: i32) -> (i32, i32, i32) {
    %c1_i32 = arith.constant 1 : i32
    %c0_i32 = arith.constant 0 : i32
    %c0_i32_0 = arith.constant 0 : i32
    return %c1_i32, %c0_i32, %arg0 : i32, i32, i32
  }
  func.func @transform_4(%arg0: i32) -> (i32, i32) {
    %c0_i32 = arith.constant 0 : i32
    %c0_i32_0 = arith.constant 0 : i32
    return %c0_i32, %arg0 : i32, i32
  }
}

</mosaic_0001>

<bundles_post_ra>
// kernel: resblock_pallas.3
= control target key start
LH: loop header
LB: loop body
LE: loop exit
PB: predicated region body
PF: predicated region fallthrough
CT: control target
= control target key end

     0   :  { %v238_v0 = vmov 0.0   ;;  %vm239_vm0 = vmmov 0   ;;  %v43_v10 = vlaneseq  ;;  %s301_s2 = inlined_call_operand.vmem [shape: bf16[2,128,128], index: 2, kind: input, shape index: {}]   ;;  %s302_s1 = inlined_call_operand.vmem [shape: bf16[8,128], index: 1, kind: input, shape index: {}]   ;;  %s303_s3 = inlined_call_operand.vmem [shape: f32[2,3,128], index: 3, kind: input, shape index: {}]   ;;  %s304_s0 = inlined_call_operand.vmem [shape: f32[8,128], index: 0, kind: input, shape index: {}, may-alias: {0,4}]   ;;  %s305_s4 = inlined_call_operand.vmem [shape: f32[8,128], index: 4, kind: output, shape index: {}, may-alias: {0,4}]  }
   0x1   :  { %206 = vmatprep.subr.bf16.mxu0 %v238_v0  ;;  %v228_v1 = vld [vmem:[%s301_s2 + $0x40] sm:$0xff]   ;;  %222 = vmatprep.mubr.msk.bf16.mxu0 %vm239_vm0, %v238_v0  ;;  %v229_v2 = vld [vmem:[%s301_s2 + $0x48] sm:$0xff]   ;;  %v230_v3 = vld [vmem:[%s301_s2 + $0x50] sm:$0xff]  }
   0x2   :  { %207 = vmatpush3.bf16.msra.mxu0 %v228_v1  ;;  %v231_v4 = vld [vmem:[%s301_s2 + $0x58] sm:$0xff]   ;;  %v232_v5 = vld [vmem:[%s301_s2 + $0x60] sm:$0xff]   ;;  %v233_v6 = vld [vmem:[%s301_s2 + $0x68] sm:$0xff]   ;;  %v44_v11 = vshrl.u32 %v43_v10, 7 }
   0x3   :  { %208 = vmatprep.subr.bf16.mxu0 %v238_v0  ;;  %v234_v7 = vld [vmem:[%s301_s2 + $0x70] sm:$0xff]   ;;  %v235_v8 = vld [vmem:[%s301_s2 + $0x78] sm:$0xff]   ;;  %v24_v9 = vld [vmem:[%s302_s1] sm:$0xf] }
   0x4   :  { %v45_v12 = vsub.s32 0, %v44_v11  ;;  %v188_v13 = vld [vmem:[%s303_s3 + $0x4] sm:$0x7]  ;;  %v158_v39 = vsub.s32 1, %v44_v11  ;;  %v163_v40 = vsub.s32 2, %v44_v11 }
   0x5   :  { %v41_v46 = vld [vmem:[%s304_s0] sm:$0xff] }
   0x6   :  { %209 = vmatpush3.bf16.msra.mxu0 %v229_v2  ;;  %v46_v14 = vrot.slane %v188_v13, %v45_v12  ;;  %v164_v44 = vrot.slane %v188_v13, %v163_v40 }
   0x7   :  { %210 = vmatprep.subr.bf16.mxu0 %v238_v0 }
   0xa   :  { %211 = vmatpush3.bf16.msra.mxu0 %v230_v3 }
   0xb   :  { %212 = vmatprep.subr.bf16.mxu0 %v238_v0 }
   0xe   :  { %213 = vmatpush3.bf16.msra.mxu0 %v231_v4 }
   0xf   :  { %214 = vmatprep.subr.bf16.mxu0 %v238_v0 }
  0x12   :  { %215 = vmatpush3.bf16.msra.mxu0 %v232_v5 }
  0x13   :  { %216 = vmatprep.subr.bf16.mxu0 %v238_v0 }
  0x16   :  { %217 = vmatpush3.bf16.msra.mxu0 %v233_v6 }
  0x17   :  { %218 = vmatprep.subr.bf16.mxu0 %v238_v0 }
  0x1a   :  { %219 = vmatpush3.bf16.msra.mxu0 %v234_v7 }
  0x1b   :  { %220 = vmatprep.subr.bf16.mxu0 %v238_v0 }
  0x1e   :  { %221 = vmatpush3.bf16.msra.mxu0 %v235_v8 }
  0x21   :  { %223 = vmatmul.mubr.bf16.vlgmr.msra.gmra.mrb[0].mxu0 %v24_v9 }
  0xf4   :  { %v129_v15 = vpop.f32.mrb[0].mxu0 }
  0xf5   :  { %v130_v16 = vadd.f32 %v129_v15, %v46_v14  ;;  %v224_v17 = vpop.f32.mrb[1].mxu0 }
  0xf6   :  { %v132_v18 = vpop.f32.mrb[2].mxu0 }
  0xf7   :  { %v135_v19 = vmul.f32 0.2, %v130_v16  ;;  %v225_v20 = vpop.f32.mrb[3].mxu0 }
  0xf9   :  { %v136_v21 = vmax.f32 %v130_v16, %v135_v19 }
  0xfb   :  { %v137_v22 = vrot.slane %v136_v21, 4 }
  0xfd   :  { %v138_v23 = vadd.f32 %v137_v22, %v136_v21 }
  0xff   :  { %v139_v24 = vrot.slane %v138_v23, 2 }
 0x101   :  { %v140_v25 = vadd.f32 %v139_v24, %v138_v23 }
 0x103   :  { %v141_v26 = vrot.slane %v140_v25, 1 }
 0x105   :  { %v142_v27 = vadd.f32 %v141_v26, %v140_v25 }
 0x107   :  { %v143_v28 = vmul.f32 0.125, %v142_v27 }
 0x109   :  { %v144_v29 = vsub.f32 %v136_v21, %v143_v28 }
 0x10b   :  { %v145_v30 = vmul.f32 %v144_v29, %v144_v29 }
 0x10d   :  { %v146_v31 = vrot.slane %v145_v30, 4 }
 0x10f   :  { %v147_v32 = vadd.f32 %v146_v31, %v145_v30 }
 0x111   :  { %v148_v33 = vrot.slane %v147_v32, 2 }
 0x113   :  { %v149_v34 = vadd.f32 %v148_v33, %v147_v32 }
 0x115   :  { %v150_v35 = vrot.slane %v149_v34, 1 }
 0x117   :  { %v151_v36 = vadd.f32 %v150_v35, %v149_v34 }
 0x119   :  { %v152_v37 = vmul.f32 0.125, %v151_v36 }
 0x11b   :  { %v153_v38 = vadd.f32 1e-05, %v152_v37 }
 0x11d   :  { %236 = vrsqrt.f32 %v153_v38 }
 0x127   :  { %v237_v41 = vpop.eup %236 }
 0x128   :  { %v155_v42 = vmul.f32 %v237_v41, %v188_v13 }
 0x12a   :  { %v159_v43 = vrot.slane %v155_v42, %v158_v39 }
 0x12c   :  { %v160_v45 = vmul.f32 %v159_v43, %v144_v29 }
 0x12e   :  { %v165_v47 = vadd.f32 %v164_v44, %v160_v45 }
 0x130   :  { %v166_v48 = vadd.f32 %v165_v47, %v41_v46 }
 0x132   :  { %167 = vst [vmem:[%s305_s4] sm:$0xff] %v166_v48 }

// kernel: resblock_pallas.2
= control target key start
LH: loop header
LB: loop body
LE: loop exit
PB: predicated region body
PF: predicated region fallthrough
CT: control target
= control target key end

     0   :  { %8 = vsyncpa [#allocation3], 0  ;;  %s253_s12 = smov [#allocation2]   ;;  %s302_s0 = inlined_call_operand.vmem [shape: bf16[8,128], index: 0, kind: input, shape index: {}]   ;;  %s303_s1 = inlined_call_operand.hbm [shape: bf16[2,128,128], index: 1, kind: input, shape index: {}]   ;;  %s304_s2 = inlined_call_operand.vmem [shape: f32[2,3,128], index: 2, kind: input, shape index: {}]   ;;  %s305_s3 = inlined_call_operand.vmem [shape: bf16[8,128], index: 3, kind: output, shape index: {}]  }
   0x1   :  { %s16_s13 = sshll.u32 %s253_s12, 4  ;;  %s229_s16 = scalar_lea.hbm %s303_s1, 1024  ;;  %s17_s13 = int_to_ptr.vmem [resolvable:$true] %s16_s13 }
   0x2   :  { %p230_p0 = scmp.ne.s32.totalorder %s303_s1, %s229_s16  ;;  %s231_s21 = scalar_lea.hbm %s303_s1, 2048 }
   0x3   :  { %p232_p1 = scmp.lt.u32.totalorder %s231_s21, %s229_s16  ;;  %p233_p2 = scmp.lt.u32.totalorder %s229_s16, %s303_s1 }
   0x5   :  { %p234_p3 = por %p233_p2, %p232_p1 }
   0x7   :  { %p235_p4 = pnand %p234_p3, %p230_p0 }
   0x9   :  { %238 = shalt.err (!%p235_p4)
}
   0xa   :  { %s239_s24 = scalar_lea.vmem %s17_s13, 1024  ;;  %p244_p6 = scmp.lt.s32.totalorder %s17_s13, %s17_s13 }
   0xb   :  { %p240_p5 = scmp.ne.s32.totalorder %s17_s13, %s239_s24  ;;  %p245_p7 = scmp.lt.s32.totalorder %s239_s24, %s239_s24 }
   0xd   :  { %p246_p8 = por %p245_p7, %p244_p6 }
   0xf   :  { %p247_p9 = pnand %p246_p8, %p240_p5 }
  0x11   :  { %250 = shalt.err (!%p247_p9)
}
  0x12   :  { %s254_s25 = smov 64   ;;  %s255_s26 = smov 4  }
  0x13   :  { %22 = dma.hbm_to_vmem [thread:$0]  %s303_s1, 1024, %s17_s13, [#allocation3], %s254_s25, %s254_s25, %s255_s26  }
  0x14   :  { %251 = dma.done.wait [#allocation3], 1024  }
  0x15   :  { %252 = vsyncadd [#allocation3], 4294966272  ;;  %v256_v0 = vmov 0.0   ;;  %vm257_vm0 = vmmov 0   ;;  %v219_v1 = vld [vmem:[#allocation2] sm:$0xff]   ;;  %v220_v2 = vld [vmem:[#allocation2 + $0x8] sm:$0xff]   ;;  %v47_v10 = vlaneseq }
  0x16   :  { %194 = vmatprep.subr.bf16.mxu0 %v256_v0  ;;  %210 = vmatprep.mubr.msk.bf16.mxu0 %vm257_vm0, %v256_v0  ;;  %v221_v3 = vld [vmem:[#allocation2 + $0x10] sm:$0xff]   ;;  %v222_v4 = vld [vmem:[#allocation2 + $0x18] sm:$0xff]   ;;  %v223_v5 = vld [vmem:[#allocation2 + $0x20] sm:$0xff]  }
  0x17   :  { %195 = vmatpush3.bf16.msra.mxu0 %v219_v1  ;;  %v224_v6 = vld [vmem:[#allocation2 + $0x28] sm:$0xff]   ;;  %v225_v7 = vld [vmem:[#allocation2 + $0x30] sm:$0xff]   ;;  %v226_v8 = vld [vmem:[#allocation2 + $0x38] sm:$0xff]   ;;  %v48_v11 = vshrl.u32 %v47_v10, 7 }
  0x18   :  { %196 = vmatprep.subr.bf16.mxu0 %v256_v0  ;;  %v29_v9 = vld [vmem:[%s302_s0] sm:$0xf] }
  0x19   :  { %v49_v12 = vsub.s32 0, %v48_v11  ;;  %v46_v13 = vld [vmem:[%s304_s2] sm:$0x7]  ;;  %v162_v39 = vsub.s32 1, %v48_v11  ;;  %v167_v40 = vsub.s32 2, %v48_v11 }
  0x1b   :  { %197 = vmatpush3.bf16.msra.mxu0 %v220_v2  ;;  %v50_v14 = vrot.slane %v46_v13, %v49_v12  ;;  %v168_v44 = vrot.slane %v46_v13, %v167_v40 }
  0x1c   :  { %198 = vmatprep.subr.bf16.mxu0 %v256_v0 }
  0x1f   :  { %199 = vmatpush3.bf16.msra.mxu0 %v221_v3 }
  0x20   :  { %200 = vmatprep.subr.bf16.mxu0 %v256_v0 }
  0x23   :  { %201 = vmatpush3.bf16.msra.mxu0 %v222_v4 }
  0x24   :  { %202 = vmatprep.subr.bf16.mxu0 %v256_v0 }
  0x27   :  { %203 = vmatpush3.bf16.msra.mxu0 %v223_v5 }
  0x28   :  { %204 = vmatprep.subr.bf16.mxu0 %v256_v0 }
  0x2b   :  { %205 = vmatpush3.bf16.msra.mxu0 %v224_v6 }
  0x2c   :  { %206 = vmatprep.subr.bf16.mxu0 %v256_v0 }
  0x2f   :  { %207 = vmatpush3.bf16.msra.mxu0 %v225_v7 }
  0x30   :  { %208 = vmatprep.subr.bf16.mxu0 %v256_v0 }
  0x33   :  { %209 = vmatpush3.bf16.msra.mxu0 %v226_v8 }
  0x36   :  { %211 = vmatmul.mubr.bf16.vlgmr.msra.gmra.mrb[0].mxu0 %v29_v9 }
 0x109   :  { %v133_v15 = vpop.f32.mrb[0].mxu0 }
 0x10a   :  { %v134_v16 = vadd.f32 %v133_v15, %v50_v14  ;;  %v212_v17 = vpop.f32.mrb[1].mxu0 }
 0x10b   :  { %v136_v18 = vpop.f32.mrb[2].mxu0 }
 0x10c   :  { %v139_v19 = vmul.f32 0.2, %v134_v16  ;;  %v213_v20 = vpop.f32.mrb[3].mxu0 }
 0x10e   :  { %v140_v21 = vmax.f32 %v134_v16, %v139_v19 }
 0x110   :  { %v141_v22 = vrot.slane %v140_v21, 4 }
 0x112   :  { %v142_v23 = vadd.f32 %v141_v22, %v140_v21 }
 0x114   :  { %v143_v24 = vrot.slane %v142_v23, 2 }
 0x116   :  { %v144_v25 = vadd.f32 %v143_v24, %v142_v23 }
 0x118   :  { %v145_v26 = vrot.slane %v144_v25, 1 }
 0x11a   :  { %v146_v27 = vadd.f32 %v145_v26, %v144_v25 }
 0x11c   :  { %v147_v28 = vmul.f32 0.125, %v146_v27 }
 0x11e   :  { %v148_v29 = vsub.f32 %v140_v21, %v147_v28 }
 0x120   :  { %v149_v30 = vmul.f32 %v148_v29, %v148_v29 }
 0x122   :  { %v150_v31 = vrot.slane %v149_v30, 4 }
 0x124   :  { %v151_v32 = vadd.f32 %v150_v31, %v149_v30 }
 0x126   :  { %v152_v33 = vrot.slane %v151_v32, 2 }
 0x128   :  { %v153_v34 = vadd.f32 %v152_v33, %v151_v32 }
 0x12a   :  { %v154_v35 = vrot.slane %v153_v34, 1 }
 0x12c   :  { %v155_v36 = vadd.f32 %v154_v35, %v153_v34 }
 0x12e   :  { %v156_v37 = vmul.f32 0.125, %v155_v36 }
 0x130   :  { %v157_v38 = vadd.f32 1e-05, %v156_v37 }
 0x132   :  { %227 = vrsqrt.f32 %v157_v38 }
 0x13c   :  { %v228_v41 = vpop.eup %227 }
 0x13d   :  { %v159_v42 = vmul.f32 %v228_v41, %v46_v13 }
 0x13f   :  { %v163_v43 = vrot.slane %v159_v42, %v162_v39 }
 0x141   :  { %v164_v45 = vmul.f32 %v163_v43, %v148_v29 }
 0x143   :  { %v169_v46 = vadd.f32 %v168_v44, %v164_v45 }
 0x145   :  { %v170_v47 = vpack.c.bf16 %v169_v46, %v169_v46 }
 0x147   :  { %171 = vst [vmem:[%s305_s3] sm:$0xf] %v170_v47 }
 0x148   :  { %176 = vsyncpa [#allocation3], 1 }

</bundles_post_ra>
